<compile_context>
chip_gen: v7x
topology: tpu7x:2x2x1
jax: 0.10.0
libtpu: 0.0.40
codegen_flags: <defaults>
</compile_context>

<pallas_src>
import jax
import jax.numpy as jnp
import numpy as np
from jax.experimental import pallas as pl
from jax.experimental.pallas import tpu as pltpu


def _round_up(x, m):
    return ((x + m - 1) // m) * m


# ---------------------------------------------------------------------------
# Pallas kernel: tiled  out = P @ E  with bf16 inputs, f32 accumulation.
# ---------------------------------------------------------------------------
def _gppr_matmul_kernel(p_ref, e_ref, o_ref, acc_ref):
    """One (row-tile i, contraction-tile k) step.

    p_ref   : VMEM (tm, tk)  bf16 tile of the propagation matrix P
    e_ref   : VMEM (tk, Dp)  bf16 tile of the ego embeddings
    o_ref   : VMEM (tm, Dp)  f32 output block (resident across k)
    acc_ref : VMEM (tm, Dp)  f32 accumulator scratch
    """
    k = pl.program_id(1)

    @pl.when(k == 0)
    def _():
        acc_ref[...] = jnp.zeros_like(acc_ref)

    acc_ref[...] += jnp.dot(p_ref[...], e_ref[...],
                            preferred_element_type=jnp.float32)

    @pl.when(k == pl.num_programs(1) - 1)
    def _():
        o_ref[...] = acc_ref[...].astype(o_ref.dtype)


def gppr_propagate(p_mat, ego_emb, *, tile=512):
    """out = p_mat @ ego_emb (f32 result) via a tiled Pallas matmul.

    p_mat   : (N, N) folded propagation matrix (bfloat16 recommended).
    ego_emb : (N, D) ego embeddings (float32 or bfloat16).
    """
    n, d = ego_emb.shape
    assert p_mat.shape == (n, n)

    # Tile / padding choice: lane-dense (multiples of 128) last dims, tiles
    # that evenly divide the padded extents.
    if n <= tile:
        n_pad = _round_up(n, 128)
        tm = tk = n_pad
    else:
        n_pad = _round_up(n, tile)
        tm = tk = tile
    d_pad = _round_up(d, 128)

    cdt = p_mat.dtype  # MXU input dtype (bf16)
    p_pad = jnp.zeros((n_pad, n_pad), cdt).at[:n, :n].set(p_mat)
    e_pad = jnp.zeros((n_pad, d_pad), cdt).at[:n, :d].set(ego_emb.astype(cdt))

    grid = (n_pad // tm, n_pad // tk)

    # Explicit VMEM budget: double-buffered inputs/outputs + f32 accumulator,
    # with generous headroom, capped well under the smallest (v7x) VMEM.
    in_itemsize = jnp.dtype(cdt).itemsize
    vmem_bytes = (2 * tm * tk * in_itemsize        # P tiles (double-buffered)
                  + 2 * tk * d_pad * in_itemsize   # E tiles (double-buffered)
                  + 2 * tm * d_pad * 4             # output tiles (f32)
                  + tm * d_pad * 4)                # accumulator scratch (f32)
    vmem_limit = min(int(vmem_bytes * 2) + (8 << 20), 48 * 1024 * 1024)

    out_pad = pl.pallas_call(
        _gppr_matmul_kernel,
        out_shape=jax.ShapeDtypeStruct((n_pad, d_pad), jnp.float32),
        grid_spec=pltpu.PrefetchScalarGridSpec(
            num_scalar_prefetch=0,
            grid=grid,
            in_specs=[
                pl.BlockSpec((tm, tk), lambda i, k: (i, k)),     # P tile
                pl.BlockSpec((tk, d_pad), lambda i, k: (k, 0)),  # E tile
            ],
            out_specs=pl.BlockSpec((tm, d_pad), lambda i, k: (i, 0)),
            scratch_shapes=[pltpu.VMEM((tm, d_pad), jnp.float32)],
        ),
        compiler_params=pltpu.CompilerParams(
            dimension_semantics=("parallel", "arbitrary"),
            vmem_limit_bytes=vmem_limit),
    )(p_pad, e_pad)

    return out_pad[:n, :d]


def gppr_forward(p_mat, user_emb, item_emb):
    """Full GPPR.forward(): returns (user_all_embeddings, item_all_embeddings)."""
    ego = jnp.concatenate([user_emb, item_emb], axis=0)
    all_emb = gppr_propagate(p_mat, ego)
    u = user_emb.shape[0]
    return all_emb[:u], all_emb[u:]


# ---------------------------------------------------------------------------
# Init-time glue (plain JAX / numpy): one-time setup, not the hot path.
# Builds gppr_1_norm_adj_matrix exactly as the PyTorch __init__ does, then
# folds the fixed alpha polynomial into a single propagation matrix P.
# ---------------------------------------------------------------------------
def build_gppr_adj(inter, beta, alpha_0, alpha_1):
    """inter: (U, I) 0/1 interaction matrix (numpy float32)."""
    u, i = inter.shape
    n = u + i
    A = np.zeros((n, n), dtype=np.float32)
    A[:u, u:] = inter
    A[u:, :u] = inter.T
    deg = (A > 0).sum(axis=1).astype(np.float32) + 1e-07
    d_inv_sqrt = np.power(deg, -0.5)
    L = (d_inv_sqrt[:, None] * A) * d_inv_sqrt[None, :]   # D^-1/2 A D^-1/2

    L = jnp.asarray(L)
    eye = jnp.eye(n, dtype=jnp.float32)
    # (I - beta*L)^{-1} @ (alpha_0*I + alpha_1*L)
    gppr = jnp.linalg.solve(eye - beta * L, alpha_0 * eye + alpha_1 * L)
    gppr = gppr / gppr.sum(axis=0, keepdims=True)
    return gppr.astype(jnp.float32)


def build_propagation_matrix(gppr_adj, alphas):
    """P = sum_k alphas[k] * gppr_adj^k, k = 0..n_layers (f32, one-time).

    Valid because both the adjacency and alpha_list are fixed at init
    (alphas are a non-trainable config constant in the module).
    """
    n = gppr_adj.shape[0]
    eye = jnp.eye(n, dtype=jnp.float32)
    p = alphas[0] * eye
    cur = eye
    for k in range(1, int(alphas.shape[0])):
        cur = gppr_adj @ cur                     # A^k
        p = p + alphas[k] * cur
    return p


def xavier_uniform(key, shape):
    # torch xavier_uniform on Embedding weight (num, dim): bound = sqrt(6/(num+dim))
    bound = float(np.sqrt(6.0 / (shape[0] + shape[1])))
    return jax.random.uniform(key, shape, jnp.float32, -bound, bound)


if __name__ == "__main__":
    # Small, deterministic synthetic setup consistent with the module's config.
    user_num, item_num = 24, 40          # N = 64
    embedding_size = 32
    n_layers = 3
    alpha_list = np.ones(n_layers + 1, dtype=np.float32)
    alpha_list = alpha_list / alpha_list.sum()     # normalized as in __init__
    beta, alpha_0, alpha_1 = 0.3, 0.5, 0.5

    key = jax.random.PRNGKey(0)
    k_inter, k_user, k_item = jax.random.split(key, 3)

    # Synthetic interaction matrix (deterministic).
    inter = np.asarray(
        (jax.random.uniform(k_inter, (user_num, item_num)) < 0.15)
    ).astype(np.float32)

    adj = build_gppr_adj(inter, beta, alpha_0, alpha_1)            # (N, N) f32
    alphas = jnp.asarray(alpha_list)
    p_f32 = build_propagation_matrix(adj, alphas)                  # folded P
    p_bf16 = p_f32.astype(jnp.bfloat16)                            # cast once at init

    user_emb = xavier_uniform(k_user, (user_num, embedding_size))
    item_emb = xavier_uniform(k_item, (item_num, embedding_size))

    u_out, i_out = jax.block_until_ready(
        gppr_forward(p_bf16, user_emb, item_emb))

    ego = jnp.concatenate([user_emb, item_emb], axis=0)

    # Check 1 (tight): kernel matches a plain-XLA bf16 matmul with f32 accum.
    ref_bf = jnp.dot(p_bf16, ego.astype(jnp.bfloat16),
                     preferred_element_type=jnp.float32)
    full_out = jnp.concatenate([u_out, i_out], axis=0)
    np.testing.assert_allclose(np.asarray(full_out), np.asarray(ref_bf),
                               rtol=1e-4, atol=1e-4)

    # Check 2 (module semantics, loose bf16 tolerance): exact per-layer f32
    # recurrence as in the PyTorch forward().
    ref = alphas[0] * ego
    cur = ego
    for k in range(1, n_layers + 1):
        cur = adj @ cur
        ref = ref + alphas[k] * cur
    np.testing.assert_allclose(np.asarray(u_out), np.asarray(ref[:user_num]),
                               rtol=3e-2, atol=1e-2)
    np.testing.assert_allclose(np.asarray(i_out), np.asarray(ref[user_num:]),
                               rtol=3e-2, atol=1e-2)

    print("KERNEL_OK")
</pallas_src>

<mosaic_0001>
module attributes {stable_mosaic.version = 11 : i64} {
  func.func @_gppr_matmul_kernel(%arg0: i32, %arg1: i32, %arg2: memref<128x128xbf16, #tpu.memory_space<vmem>>, %arg3: memref<128x128xbf16, #tpu.memory_space<vmem>>, %arg4: memref<128x128xf32, #tpu.memory_space<vmem>>, %arg5: memref<128x128xf32, #tpu.memory_space<vmem>>) attributes {dimension_semantics = [#tpu.dimension_semantics<parallel>, #tpu.dimension_semantics<arbitrary>], iteration_bounds = array<i64: 1, 1>, scalar_prefetch = 0 : i64, scratch_operands = 1 : i64, tpu.core_type = #tpu.core_type<tc>, window_params = [{transform_indices = @transform_0, window_bounds = array<i64: 128, 128>}, {transform_indices = @transform_1, window_bounds = array<i64: 128, 128>}, {transform_indices = @transform_2, window_bounds = array<i64: 128, 128>}]} {
    %c0_i32 = arith.constant 0 : i32
    %0 = arith.cmpi eq, %arg1, %c0_i32 : i32
    %1 = arith.extui %0 : i1 to i32
    %c0_i32_0 = arith.constant 0 : i32
    %2 = arith.cmpi ne, %1, %c0_i32_0 : i32
    scf.if %2 {
      %cst_10 = arith.constant 0.000000e+00 : f32
      %12 = vector.broadcast %cst_10 : f32 to vector<128x128xf32>
      %c0_11 = arith.constant 0 : index
      %c0_12 = arith.constant 0 : index
      %13 = vector.load %arg5[%c0_11, %c0_12] : memref<128x128xf32, #tpu.memory_space<vmem>>, vector<128x128xf32>
      tpu.vector_store %arg5[%c0_11, %c0_12], %12 {strides = array<i32>} : memref<128x128xf32, #tpu.memory_space<vmem>>, vector<128x128xf32>,
    } else {
    }
    %c0 = arith.constant 0 : index
    %c0_1 = arith.constant 0 : index
    %3 = vector.load %arg5[%c0, %c0_1] : memref<128x128xf32, #tpu.memory_space<vmem>>, vector<128x128xf32>
    %c0_2 = arith.constant 0 : index
    %c0_3 = arith.constant 0 : index
    %4 = vector.load %arg2[%c0_2, %c0_3] : memref<128x128xbf16, #tpu.memory_space<vmem>>, vector<128x128xbf16>
    %c0_4 = arith.constant 0 : index
    %c0_5 = arith.constant 0 : index
    %5 = vector.load %arg3[%c0_4, %c0_5] : memref<128x128xbf16, #tpu.memory_space<vmem>>, vector<128x128xbf16>
    %cst = arith.constant dense<0.000000e+00> : vector<128x128xf32>
    %6 = tpu.matmul %4, %5, %cst {dimension_numbers = #tpu.dot_dimension_numbers<[1], [0], [0], [1], [0, 0, 1, 1], [], []>} : vector<128x128xbf16>, vector<128x128xbf16>, vector<128x128xf32> -> vector<128x128xf32>
    %7 = arith.addf %3, %6 : vector<128x128xf32>
    %c0_6 = arith.constant 0 : index
    %c0_7 = arith.constant 0 : index
    %8 = vector.load %arg5[%c0_6, %c0_7] : memref<128x128xf32, #tpu.memory_space<vmem>>, vector<128x128xf32>
    tpu.vector_store %arg5[%c0_6, %c0_7], %7 {strides = array<i32>} : memref<128x128xf32, #tpu.memory_space<vmem>>, vector<128x128xf32>,
    %c0_i32_8 = arith.constant 0 : i32
    %9 = arith.cmpi eq, %arg1, %c0_i32_8 : i32
    %10 = arith.extui %9 : i1 to i32
    %c0_i32_9 = arith.constant 0 : i32
    %11 = arith.cmpi ne, %10, %c0_i32_9 : i32
    scf.if %11 {
      %c0_10 = arith.constant 0 : index
      %c0_11 = arith.constant 0 : index
      %12 = vector.load %arg5[%c0_10, %c0_11] : memref<128x128xf32, #tpu.memory_space<vmem>>, vector<128x128xf32>
      %c0_12 = arith.constant 0 : index
      %c0_13 = arith.constant 0 : index
      %13 = vector.load %arg4[%c0_12, %c0_13] : memref<128x128xf32, #tpu.memory_space<vmem>>, vector<128x128xf32>
      tpu.vector_store %arg4[%c0_12, %c0_13], %12 {strides = array<i32>} : memref<128x128xf32, #tpu.memory_space<vmem>>, vector<128x128xf32>,
    } else {
    }
    return
  }
  func.func @transform_0(%arg0: i32, %arg1: i32) -> (i32, i32) {
    %c0_i32 = arith.constant 0 : i32
    return %arg0, %arg1 : i32, i32
  }
  func.func @transform_1(%arg0: i32, %arg1: i32) -> (i32, i32) {
    %c0_i32 = arith.constant 0 : i32
    %c0_i32_0 = arith.constant 0 : i32
    return %arg1, %c0_i32 : i32, i32
  }
  func.func @transform_2(%arg0: i32, %arg1: i32) -> (i32, i32) {
    %c0_i32 = arith.constant 0 : i32
    %c0_i32_0 = arith.constant 0 : i32
    return %arg0, %c0_i32 : i32, i32
  }
}

</mosaic_0001>

<bundles_post_ra>
// kernel: tpu_custom_call.1
= control target key start
LH: loop header
LB: loop body
LE: loop exit
PB: predicated region body
PF: predicated region fallthrough
CT: control target
= control target key end

     0   :  { %7 = vsyncpa [#allocation4], 0  ;;  %s620_s0 = inlined_call_operand.hbm [shape: bf16[128,128], index: 0, kind: input, shape index: {}]   ;;  %s621_s1 = inlined_call_operand.hbm [shape: bf16[128,128], index: 1, kind: input, shape index: {}]   ;;  %s622_s2 = inlined_call_operand.hbm [shape: f32[128,128], index: 2, kind: output, shape index: {}]  }
   0x1   :  { %8 = vsyncpa [#allocation7], 0 }
   0x2   :  { %9 = vsyncpa [#allocation5], 0  ;;  %s562_s9 = smov [#allocation3]   ;;  %s490_s13 = scalar_lea.hbm %s620_s0, 1024 }
   0x3   :  { %s15_s10 = sshll.u32 %s562_s9, 4  ;;  %p491_p0 = scmp.ne.s32.totalorder %s620_s0, %s490_s13  ;;  %s16_s10 = int_to_ptr.vmem [resolvable:$true] %s15_s10 }
   0x4   :  { %p494_p1 = scmp.lt.u32.totalorder %s490_s13, %s620_s0 }
   0x6   :  { %p496_p2 = pnand %p494_p1, %p491_p0 }
   0x8   :  { %499 = shalt.err (!%p496_p2)
}
   0x9   :  { %s500_s18 = scalar_lea.vmem %s16_s10, 1024  ;;  %p505_p4 = scmp.lt.s32.totalorder %s16_s10, %s16_s10 }
   0xa   :  { %p501_p3 = scmp.ne.s32.totalorder %s16_s10, %s500_s18  ;;  %p506_p5 = scmp.lt.s32.totalorder %s500_s18, %s500_s18 }
   0xc   :  { %p507_p6 = por %p506_p5, %p505_p4 }
   0xe   :  { %p508_p7 = pnand %p507_p6, %p501_p3 }
  0x10   :  { %511 = shalt.err (!%p508_p7)
}
  0x11   :  { %s563_s19 = smov 64   ;;  %s564_s20 = smov 4  }
  0x12   :  { %21 = dma.hbm_to_vmem [thread:$0]  %s620_s0, 1024, %s16_s10, [#allocation4], %s563_s19, %s563_s19, %s564_s20  }
  0x13   :  { %s565_s23 = smov [#allocation6]   ;;  %s512_s27 = scalar_lea.hbm %s621_s1, 1024 }
  0x14   :  { %s27_s24 = sshll.u32 %s565_s23, 4  ;;  %p513_p8 = scmp.ne.s32.totalorder %s621_s1, %s512_s27  ;;  %s28_s24 = int_to_ptr.vmem [resolvable:$true] %s27_s24 }
  0x15   :  { %p516_p9 = scmp.lt.u32.totalorder %s512_s27, %s621_s1 }
  0x17   :  { %p518_p10 = pnand %p516_p9, %p513_p8 }
  0x19   :  { %521 = shalt.err (!%p518_p10)
}
  0x1a   :  { %s522_s4 = scalar_lea.vmem %s28_s24, 1024  ;;  %p527_p12 = scmp.lt.s32.totalorder %s28_s24, %s28_s24 }
  0x1b   :  { %p523_p11 = scmp.ne.s32.totalorder %s28_s24, %s522_s4  ;;  %p528_p13 = scmp.lt.s32.totalorder %s522_s4, %s522_s4 }
  0x1d   :  { %p529_p0 = por %p528_p13, %p527_p12 }
  0x1f   :  { %p530_p1 = pnand %p529_p0, %p523_p11 }
  0x21   :  { %533 = shalt.err (!%p530_p1)
}
  0x22   :  { %33 = dma.hbm_to_vmem [thread:$0]  %s621_s1, 1024, %s28_s24, [#allocation7], %s563_s19, %s563_s19, %s564_s20  }
  0x23   :  { %556 = dma.done.wait [#allocation4], 1024  }
  0x24   :  { %557 = vsyncadd [#allocation4], 4294966272 }
  0x25   :  { %558 = dma.done.wait [#allocation7], 1024  }
  0x26   :  { %559 = vsyncadd [#allocation7], 4294966272  ;;  %v474_v0 = vld [vmem:[#allocation6] sm:$0xff]   ;;  %v475_v1 = vld [vmem:[#allocation6 + $0x8] sm:$0xff]   ;;  %s566_s1 = smov [#allocation8]  }
  0x27   :  { %419 = vmatprep.subr.bf16.mxu0 %v474_v0  ;;  %451 = vmatprep.subr.bf16.mxu1 %v474_v0  ;;  %v476_v2 = vld [vmem:[#allocation6 + $0x10] sm:$0xff]   ;;  %v477_v3 = vld [vmem:[#allocation6 + $0x18] sm:$0xff]   ;;  %v482_v4 = vld [vmem:[#allocation3] sm:$0xff]   ;;  %s374_s6 = sshll.u32 %s566_s1, 4  ;;  %s375_s6 = int_to_ptr.vmem [resolvable:$true] %s374_s6 }
  0x28   :  { %420 = vmatpush3.bf16.msra.mxu0 %v474_v0  ;;  %459 = vmatpush3.bf16.msra.mxu1 %v474_v0  ;;  %v483_v5 = vld [vmem:[#allocation3 + $0x20] sm:$0xff]   ;;  %v479_v7 = vld [vmem:[#allocation6 + $0x28] sm:$0xff]   ;;  %v480_v8 = vld [vmem:[#allocation6 + $0x30] sm:$0xff]   ;;  %s534_s7 = scalar_lea.vmem %s375_s6, 2048  ;;  %p539_p3 = scmp.lt.s32.totalorder %s375_s6, %s375_s6 }
  0x29   :  { %421 = vmatprep.subr.bf16.mxu0 %v475_v1  ;;  %452 = vmatprep.subr.bf16.mxu1 %v475_v1  ;;  %v478_v6 = vld [vmem:[#allocation6 + $0x20] sm:$0xff]   ;;  %v481_v9 = vld [vmem:[#allocation6 + $0x38] sm:$0xff]   ;;  %v484_v10 = vld [vmem:[#allocation3 + $0x8] sm:$0xff]   ;;  %p535_p2 = scmp.ne.s32.totalorder %s375_s6, %s534_s7  ;;  %p540_p4 = scmp.lt.s32.totalorder %s534_s7, %s534_s7 }
  0x2a   :  { %435 = vmatprep.mubr.bf16.mxu0 %v482_v4  ;;  %443 = vmatprep.mubr.bf16.mxu1 %v483_v5  ;;  %v485_v11 = vld [vmem:[#allocation3 + $0x28] sm:$0xff]   ;;  %v486_v12 = vld [vmem:[#allocation3 + $0x10] sm:$0xff]   ;;  %v488_v14 = vld [vmem:[#allocation3 + $0x18] sm:$0xff]  }
  0x2b   :  { %v487_v13 = vld [vmem:[#allocation3 + $0x30] sm:$0xff]   ;;  %v489_v15 = vld [vmem:[#allocation3 + $0x38] sm:$0xff]   ;;  %p541_p5 = por %p540_p4, %p539_p3 }
  0x2c   :  { %422 = vmatpush3.bf16.msra.mxu0 %v475_v1  ;;  %460 = vmatpush3.bf16.msra.mxu1 %v475_v1 }
  0x2d   :  { %423 = vmatprep.subr.bf16.mxu0 %v476_v2  ;;  %453 = vmatprep.subr.bf16.mxu1 %v476_v2  ;;  %p542_p6 = pnand %p541_p5, %p535_p2 }
  0x30   :  { %424 = vmatpush3.bf16.msra.mxu0 %v476_v2  ;;  %461 = vmatpush3.bf16.msra.mxu1 %v476_v2 }
  0x31   :  { %425 = vmatprep.subr.bf16.mxu0 %v477_v3  ;;  %454 = vmatprep.subr.bf16.mxu1 %v477_v3 }
  0x34   :  { %426 = vmatpush3.bf16.msra.mxu0 %v477_v3  ;;  %462 = vmatpush3.bf16.msra.mxu1 %v477_v3 }
  0x35   :  { %427 = vmatprep.subr.bf16.mxu0 %v478_v6  ;;  %455 = vmatprep.subr.bf16.mxu1 %v478_v6 }
  0x38   :  { %428 = vmatpush3.bf16.msra.mxu0 %v478_v6  ;;  %463 = vmatpush3.bf16.msra.mxu1 %v478_v6 }
  0x39   :  { %429 = vmatprep.subr.bf16.mxu0 %v479_v7  ;;  %456 = vmatprep.subr.bf16.mxu1 %v479_v7 }
  0x3c   :  { %430 = vmatpush3.bf16.msra.mxu0 %v479_v7  ;;  %464 = vmatpush3.bf16.msra.mxu1 %v479_v7 }
  0x3d   :  { %431 = vmatprep.subr.bf16.mxu0 %v480_v8  ;;  %457 = vmatprep.subr.bf16.mxu1 %v480_v8 }
  0x40   :  { %432 = vmatpush3.bf16.msra.mxu0 %v480_v8  ;;  %465 = vmatpush3.bf16.msra.mxu1 %v480_v8 }
  0x41   :  { %433 = vmatprep.subr.bf16.mxu0 %v481_v9  ;;  %458 = vmatprep.subr.bf16.mxu1 %v481_v9 }
  0x44   :  { %434 = vmatpush3.bf16.msra.mxu0 %v481_v9  ;;  %466 = vmatpush3.bf16.msra.mxu1 %v481_v9 }
  0x47   :  { %436 = vmatmul.mubr.bf16.vlgmr.msra.gmra.mrb[0].mxu0 %v484_v10  ;;  %444 = vmatmul.mubr.bf16.vlgmr.msra.gmra.mrb[0].mxu1 %v485_v11 }
  0x48   :  { %439 = vmatprep.mubr.bf16.mxu0 %v486_v12  ;;  %447 = vmatprep.mubr.bf16.mxu1 %v487_v13 }
  0x4f   :  { %440 = vmatmul.mubr.bf16.gmra.mrb[4].mxu0 %v488_v14  ;;  %448 = vmatmul.mubr.bf16.gmra.mrb[4].mxu1 %v489_v15 }
 0x11a   :  { %v437_v16 = vpop.f32.mrb[0].mxu0  ;;  %v445_v17 = vpop.f32.mrb[0].mxu1 }
 0x11b   :  { %355 = vst [vmem:[#allocation8 + $0x10] sm:$0xff] %v437_v16  ;;  %363 = vst [vmem:[#allocation8 + $0x50] sm:$0xff] %v445_v17  ;;  %v239_v18 = vpop.f32.mrb[1].mxu0  ;;  %v271_v19 = vpop.f32.mrb[1].mxu1 }
 0x11c   :  { %353 = vst [vmem:[#allocation8] sm:$0xff] %v239_v18  ;;  %361 = vst [vmem:[#allocation8 + $0x40] sm:$0xff] %v271_v19  ;;  %v438_v20 = vpop.f32.mrb[2].mxu0  ;;  %v446_v21 = vpop.f32.mrb[2].mxu1 }
 0x11d   :  { %356 = vst [vmem:[#allocation8 + $0x18] sm:$0xff] %v438_v20  ;;  %364 = vst [vmem:[#allocation8 + $0x58] sm:$0xff] %v446_v21  ;;  %v242_v22 = vpop.f32.mrb[3].mxu0  ;;  %v274_v23 = vpop.f32.mrb[3].mxu1 }
 0x11e   :  { %354 = vst [vmem:[#allocation8 + $0x8] sm:$0xff] %v242_v22  ;;  %362 = vst [vmem:[#allocation8 + $0x48] sm:$0xff] %v274_v23 }
 0x122   :  { %v441_v24 = vpop.f32.mrb[4].mxu0  ;;  %v449_v25 = vpop.f32.mrb[4].mxu1 }
 0x123   :  { %359 = vst [vmem:[#allocation8 + $0x30] sm:$0xff] %v441_v24  ;;  %367 = vst [vmem:[#allocation8 + $0x70] sm:$0xff] %v449_v25  ;;  %v255_v26 = vpop.f32.mrb[5].mxu0  ;;  %v287_v27 = vpop.f32.mrb[5].mxu1 }
 0x124   :  { %357 = vst [vmem:[#allocation8 + $0x20] sm:$0xff] %v255_v26  ;;  %365 = vst [vmem:[#allocation8 + $0x60] sm:$0xff] %v287_v27  ;;  %v442_v28 = vpop.f32.mrb[6].mxu0  ;;  %v450_v29 = vpop.f32.mrb[6].mxu1 }
 0x125   :  { %360 = vst [vmem:[#allocation8 + $0x38] sm:$0xff] %v442_v28  ;;  %368 = vst [vmem:[#allocation8 + $0x78] sm:$0xff] %v450_v29  ;;  %v258_v30 = vpop.f32.mrb[7].mxu0  ;;  %v290_v31 = vpop.f32.mrb[7].mxu1 }
 0x126   :  { %358 = vst [vmem:[#allocation8 + $0x28] sm:$0xff] %v258_v30  ;;  %366 = vst [vmem:[#allocation8 + $0x68] sm:$0xff] %v290_v31 }
 0x127   :  { %545 = shalt.err (!%p542_p6)
}
 0x128   :  { %s546_s10 = scalar_lea.hbm %s622_s2, 2048 }
 0x129   :  { %p547_p7 = scmp.ne.s32.totalorder %s622_s2, %s546_s10  ;;  %p550_p8 = scmp.lt.u32.totalorder %s546_s10, %s622_s2 }
 0x12b   :  { %p552_p9 = pnand %p550_p8, %p547_p7 }
 0x12d   :  { %555 = shalt.err (!%p552_p9)
}
 0x12e   :  { %s567_s15 = smov 128   ;;  %s568_s16 = smov 8  }
 0x12f   :  { %380 = dma.vmem_to_hbm [thread:$0]  %s375_s6, 2048, %s622_s2, [#allocation5], %s567_s15, %s567_s15, %s568_s16  }
 0x130   :  { %560 = dma.done.wait [#allocation5], 2048  }
 0x131   :  { %561 = vsyncadd [#allocation5], 4294965248 }
 0x132   :  { %384 = vsyncpa [#allocation4], 1 }
 0x133   :  { %385 = vsyncpa [#allocation7], 1 }
 0x134   :  { %386 = vsyncpa [#allocation5], 1 }

</bundles_post_ra>
